<compile_context>
chip_gen: v7x
topology: tpu7x:2x2x1
jax: 0.10.0
libtpu: 0.0.40
codegen_flags: <defaults>
</compile_context>

<pallas_src>
import jax
import jax.numpy as jnp
from jax.experimental import pallas as pl
from jax.experimental.pallas import tpu as pltpu


def _make_bce_kernel(rows, tile_m, lanes, ragged, binary_targets):
    """Partial-sum BCE kernel (positive-log convention; sign folded in wrapper).

    binary_targets=True halves EUP work (one log) but is only valid for hard
    0/1 labels; it stays opt-in — default False matches nn.BCELoss exactly.
    """
    groups = tile_m // 8

    def kernel(pred_ref, target_ref, out_ref, acc_ref):
        j = pl.program_id(1)

        @pl.when(j == 0)
        def _init():
            acc_ref[...] = jnp.zeros_like(acc_ref)

        p = pred_ref[...].astype(jnp.float32)
        t = target_ref[...].astype(jnp.float32)

        if binary_targets:
            # Fast path: one transcendental per element.
            chosen = jnp.where(t > 0.5, p, 1.0 - p)
            loss = jnp.maximum(jnp.log(chosen), jnp.float32(-100.0))
        else:
            # nn.BCELoss clamps each log term at -100.  Unsigned form:
            #   t*log(p) + (1-t)*log(1-p) = log1mp + t*(log_p - log1mp)
            log_p = jnp.maximum(jnp.log(p), jnp.float32(-100.0))
            log_1mp = jnp.maximum(jnp.log(1.0 - p), jnp.float32(-100.0))
            loss = log_1mp + t * (log_p - log_1mp)

        if ragged:
            # Zero contributions from rows past the end of the real slab: the
            # last (or phantom) block's DMA is clamped, so those rows hold
            # garbage.  Masking AFTER the log is safe — jnp.where never
            # propagates NaN/inf from unselected lanes.
            b = pl.program_id(0) * pl.num_programs(1) + j
            valid_rows = rows - b * tile_m          # <= 0 for phantom blocks
            row_ids = jax.lax.broadcasted_iota(jnp.int32, (tile_m, lanes), 0)
            loss = jnp.where(row_ids < valid_rows, loss, 0.0)

        # Sublane-aligned vreg adds: (tile_m, lanes) -> (8, lanes).  Same VALU
        # add count, but only one accumulator load/store per grid step.
        acc_ref[...] += loss.reshape(groups, 8, lanes).sum(axis=0)

        @pl.when(j == pl.num_programs(1) - 1)
        def _finalize():
            out_ref[0, 0] = jnp.sum(acc_ref[...])

    return kernel


def bce_loss(pred, target, *, lanes=128, block_bytes=2 * 1024 * 1024, nsplit=2,
             binary_targets=False):
    """Mean BCE over all elements (== nn.BCELoss()(pred.view(B,-1), target.view(B,-1)))."""
    assert pred.shape == target.shape
    total = int(pred.size)

    pred_flat = pred.reshape(-1)       # free (contiguous bitcast)
    target_flat = target.reshape(-1)

    rem = total % lanes
    if rem:
        # Rare fallback: total not a multiple of 128.  Pad by < `lanes`
        # elements with (pred=1, target=1), which contributes exactly 0 loss.
        pad = lanes - rem
        pred_flat = jnp.pad(pred_flat, (0, pad), constant_values=1.0)
        target_flat = jnp.pad(target_flat, (0, pad), constant_values=1.0)
    rows = pl.cdiv(total, lanes)

    pred2 = pred_flat.reshape(rows, lanes)      # free reshape of the flat array
    target2 = target_flat.reshape(rows, lanes)

    if rows < 16:
        # Tiny input: round the slab up to one 16-row block (zero-loss padding;
        # the copy here is at most a few KiB).
        pad_rows = 16 - rows
        pred2 = jnp.pad(pred2, ((0, pad_rows), (0, 0)), constant_values=1.0)
        target2 = jnp.pad(target2, ((0, pad_rows), (0, 0)), constant_values=1.0)
        rows = 16

    # Rows per grid step: multiple of 16 (bf16-friendly tiling), capped so one
    # block is ~block_bytes per input.  At the 2 MiB default the double-buffered
    # pipeline is ~8 MiB — inside v5e's 16 MiB default scoped VMEM; bump
    # block_bytes to 4 MiB on v6e/v7x (still well under their 32 MiB default).
    itemsize = pred.dtype.itemsize
    cap = max(16, (block_bytes // (lanes * itemsize)) // 16 * 16)
    tile_m = min(cap, 16 * pl.cdiv(rows, 16))
    nblocks = pl.cdiv(rows, tile_m)
    nsplit = max(1, min(nsplit, nblocks))
    tiles_per_split = pl.cdiv(nblocks, nsplit)

    # Does any block window run past the end of the slab (ragged tail or a
    # phantom block when nblocks isn't a multiple of nsplit)?
    ragged = (rows % tile_m != 0) or (nblocks % nsplit != 0)

    if ragged:
        def row_map(s, j):
            # Clamp phantom blocks onto the last real block; the in-kernel mask
            # zeroes their contribution.
            return (jnp.minimum(s * tiles_per_split + j, nblocks - 1), 0)
    else:
        def row_map(s, j):
            return (s * tiles_per_split + j, 0)

    partials = pl.pallas_call(
        _make_bce_kernel(rows, tile_m, lanes, ragged, binary_targets),
        out_shape=jax.ShapeDtypeStruct((nsplit, 1), jnp.float32),
        grid_spec=pltpu.PrefetchScalarGridSpec(
            num_scalar_prefetch=0,
            grid=(nsplit, tiles_per_split),
            in_specs=[
                pl.BlockSpec((tile_m, lanes), row_map),
                pl.BlockSpec((tile_m, lanes), row_map),
            ],
            out_specs=pl.BlockSpec((1, 1), lambda s, j: (s, 0),
                                   memory_space=pltpu.SMEM),
            scratch_shapes=[pltpu.VMEM((8, lanes), jnp.float32)],
        ),
        compiler_params=pltpu.CompilerParams(
            # Leading axis shards across TensorCores on v7x; reduction axis last.
            dimension_semantics=("parallel", "arbitrary"),
        ),
    )(pred2, target2)

    # Tiny finalize in the wrapper: add the per-split partials; fold the BCE
    # minus sign and the mean divide (Python-float reciprocal for precision).
    return jnp.sum(partials) * jnp.float32(-1.0 / total)


if __name__ == "__main__":
    key = jax.random.PRNGKey(0)
    k1, k2 = jax.random.split(key)

    def reference(pred, target):
        p = pred.reshape(pred.shape[0], -1).astype(jnp.float32)
        t = target.reshape(target.shape[0], -1).astype(jnp.float32)
        return jnp.mean(
            -(t * jnp.maximum(jnp.log(p), -100.0)
              + (1.0 - t) * jnp.maximum(jnp.log(1.0 - p), -100.0)))

    # NCHW inputs; pred must lie in (0, 1) for BCELoss.
    shape = (2, 4, 16, 16)
    pred = jax.nn.sigmoid(jax.random.normal(k1, shape, dtype=jnp.float32))
    target = (jax.random.uniform(k2, shape) > 0.5).astype(jnp.float32)

    ref = reference(pred, target)

    loss = jax.block_until_ready(bce_loss(pred, target))
    assert jnp.allclose(loss, ref, rtol=1e-5, atol=1e-5), (loss, ref)

    # bf16 input path (math stays f32 in-kernel).
    loss_bf16 = jax.block_until_ready(
        bce_loss(pred.astype(jnp.bfloat16), target.astype(jnp.bfloat16)))
    assert jnp.allclose(loss_bf16, ref, rtol=2e-2, atol=2e-2), (loss_bf16, ref)

    # Opt-in hard-label fast path (targets here are exactly 0/1).
    loss_bin = jax.block_until_ready(bce_loss(pred, target, binary_targets=True))
    assert jnp.allclose(loss_bin, ref, rtol=1e-5, atol=1e-5), (loss_bin, ref)

    # Multi-block ragged slab (total % 128 == 0, rows % tile_m != 0): exercises
    # the zero-copy path with the in-kernel OOB row mask across two grid splits.
    k3, k4 = jax.random.split(k2)
    shape2 = (2, 3, 24, 24)   # total = 3456 -> rows = 27
    pred2 = jax.nn.sigmoid(jax.random.normal(k3, shape2, dtype=jnp.float32))
    target2 = (jax.random.uniform(k4, shape2) > 0.5).astype(jnp.float32)
    loss2 = jax.block_until_ready(bce_loss(pred2, target2, block_bytes=8192))
    ref2 = reference(pred2, target2)
    assert jnp.allclose(loss2, ref2, rtol=1e-5, atol=1e-5), (loss2, ref2)

    print("KERNEL_OK")
</pallas_src>

<mosaic_0001>
module attributes {stable_mosaic.version = 11 : i64} {
  func.func @kernel(%arg0: i32, %arg1: i32, %arg2: memref<16x128xf32, #tpu.memory_space<vmem>>, %arg3: memref<16x128xf32, #tpu.memory_space<vmem>>, %arg4: memref<1x1xf32, #tpu.memory_space<smem>>, %arg5: memref<8x128xf32, #tpu.memory_space<vmem>>) attributes {dimension_semantics = [#tpu.dimension_semantics<parallel>, #tpu.dimension_semantics<arbitrary>], iteration_bounds = array<i64: 1, 1>, scalar_prefetch = 0 : i64, scratch_operands = 1 : i64, tpu.core_type = #tpu.core_type<tc>, window_params = [{transform_indices = @transform_0, window_bounds = array<i64: 16, 128>}, {transform_indices = @transform_1, window_bounds = array<i64: 16, 128>}, {transform_indices = @transform_2, window_bounds = array<i64: 1, 1>}]} {
    %c0_i32 = arith.constant 0 : i32
    %0 = arith.cmpi eq, %arg1, %c0_i32 : i32
    %1 = arith.extui %0 : i1 to i32
    %c0_i32_0 = arith.constant 0 : i32
    %2 = arith.cmpi ne, %1, %c0_i32_0 : i32
    scf.if %2 {
      %cst_13 = arith.constant 0.000000e+00 : f32
      %24 = vector.broadcast %cst_13 : f32 to vector<8x128xf32>
      %c0_14 = arith.constant 0 : index
      %c0_15 = arith.constant 0 : index
      %25 = vector.load %arg5[%c0_14, %c0_15] : memref<8x128xf32, #tpu.memory_space<vmem>>, vector<8x128xf32>
      tpu.vector_store %arg5[%c0_14, %c0_15], %24 {strides = array<i32>} : memref<8x128xf32, #tpu.memory_space<vmem>>, vector<8x128xf32>,
    } else {
    }
    %c0 = arith.constant 0 : index
    %c0_1 = arith.constant 0 : index
    %3 = vector.load %arg2[%c0, %c0_1] : memref<16x128xf32, #tpu.memory_space<vmem>>, vector<16x128xf32>
    %c0_2 = arith.constant 0 : index
    %c0_3 = arith.constant 0 : index
    %4 = vector.load %arg3[%c0_2, %c0_3] : memref<16x128xf32, #tpu.memory_space<vmem>>, vector<16x128xf32>
    %5 = math.log %3 : vector<16x128xf32>
    %cst = arith.constant -1.000000e+02 : f32
    %6 = vector.broadcast %cst : f32 to vector<16x128xf32>
    %7 = arith.maximumf %5, %6 : vector<16x128xf32>
    %cst_4 = arith.constant 1.000000e+00 : f32
    %8 = vector.broadcast %cst_4 : f32 to vector<16x128xf32>
    %9 = arith.subf %8, %3 : vector<16x128xf32>
    %10 = math.log %9 : vector<16x128xf32>
    %cst_5 = arith.constant -1.000000e+02 : f32
    %11 = vector.broadcast %cst_5 : f32 to vector<16x128xf32>
    %12 = arith.maximumf %10, %11 : vector<16x128xf32>
    %13 = arith.subf %7, %12 : vector<16x128xf32>
    %14 = arith.mulf %4, %13 : vector<16x128xf32>
    %15 = arith.addf %12, %14 : vector<16x128xf32>
    %c0_6 = arith.constant 0 : index
    %c0_7 = arith.constant 0 : index
    %16 = vector.load %arg5[%c0_6, %c0_7] : memref<8x128xf32, #tpu.memory_space<vmem>>, vector<8x128xf32>
    %17 = vector.shape_cast %15 : vector<16x128xf32> to vector<2x8x128xf32>
    %cst_8 = arith.constant dense<0.000000e+00> : vector<8x128xf32>
    %18 = vector.multi_reduction <add>, %17, %cst_8 [0] : vector<2x8x128xf32> to vector<8x128xf32>
    %19 = arith.addf %16, %18 : vector<8x128xf32>
    %c0_9 = arith.constant 0 : index
    %c0_10 = arith.constant 0 : index
    %20 = vector.load %arg5[%c0_9, %c0_10] : memref<8x128xf32, #tpu.memory_space<vmem>>, vector<8x128xf32>
    tpu.vector_store %arg5[%c0_9, %c0_10], %19 {strides = array<i32>} : memref<8x128xf32, #tpu.memory_space<vmem>>, vector<8x128xf32>,
    %c0_i32_11 = arith.constant 0 : i32
    %21 = arith.cmpi eq, %arg1, %c0_i32_11 : i32
    %22 = arith.extui %21 : i1 to i32
    %c0_i32_12 = arith.constant 0 : i32
    %23 = arith.cmpi ne, %22, %c0_i32_12 : i32
    scf.if %23 {
      %c0_13 = arith.constant 0 : index
      %c0_14 = arith.constant 0 : index
      %24 = vector.load %arg5[%c0_13, %c0_14] : memref<8x128xf32, #tpu.memory_space<vmem>>, vector<8x128xf32>
      %25 = vector.shape_cast %24 : vector<8x128xf32> to vector<1x8x128xf32>
      %cst_15 = arith.constant dense<0.000000e+00> : vector<1xf32>
      %26 = vector.multi_reduction <add>, %25, %cst_15 [1, 2] : vector<1x8x128xf32> to vector<1xf32>
      %27 = vector.shape_cast %26 : vector<1xf32> to vector<1x1x1xf32>
      %28 = vector.extract %27[0, 0, 0] : f32 from vector<1x1x1xf32>
      %c0_16 = arith.constant 0 : index
      %c0_17 = arith.constant 0 : index
      %29 = memref.load %arg4[%c0_16, %c0_17] : memref<1x1xf32, #tpu.memory_space<smem>>
      memref.store %28, %arg4[%c0_16, %c0_17] : memref<1x1xf32, #tpu.memory_space<smem>>
    } else {
    }
    return
  }
  func.func @transform_0(%arg0: i32, %arg1: i32) -> (i32, i32) {
    %c1_i32 = arith.constant 1 : i32
    %0 = arith.muli %arg0, %c1_i32 : i32
    %1 = arith.addi %0, %arg1 : i32
    %c0_i32 = arith.constant 0 : i32
    %c0_i32_0 = arith.constant 0 : i32
    return %1, %c0_i32 : i32, i32
  }
  func.func @transform_1(%arg0: i32, %arg1: i32) -> (i32, i32) {
    %c1_i32 = arith.constant 1 : i32
    %0 = arith.muli %arg0, %c1_i32 : i32
    %1 = arith.addi %0, %arg1 : i32
    %c0_i32 = arith.constant 0 : i32
    %c0_i32_0 = arith.constant 0 : i32
    return %1, %c0_i32 : i32, i32
  }
  func.func @transform_2(%arg0: i32, %arg1: i32) -> (i32, i32) {
    %c0_i32 = arith.constant 0 : i32
    %c0_i32_0 = arith.constant 0 : i32
    return %arg0, %c0_i32 : i32, i32
  }
}

</mosaic_0001>

<bundles_post_ra>
// kernel: tpu_custom_call.1
= control target key start
LH: loop header
LB: loop body
LE: loop exit
PB: predicated region body
PF: predicated region fallthrough
CT: control target
= control target key end

     0   :  { %7 = vsyncpa [#allocation4], 0  ;;  %s246_s0 = inlined_call_operand.hbm [shape: f32[16,128], index: 0, kind: input, shape index: {}]   ;;  %s247_s1 = inlined_call_operand.hbm [shape: f32[16,128], index: 1, kind: input, shape index: {}]   ;;  %s248_s2 = inlined_call_operand.hbm [shape: f32[1,1], index: 2, kind: output, shape index: {}]  }
   0x1   :  { %8 = vsyncpa [#allocation7], 0 }
   0x2   :  { %9 = vsyncpa [#allocation5], 0  ;;  %s190_s9 = smov [#allocation3]   ;;  %s130_s13 = scalar_lea.hbm %s246_s0, 256 }
   0x3   :  { %s19_s10 = sshll.u32 %s190_s9, 4  ;;  %p131_p0 = scmp.ne.s32.totalorder %s246_s0, %s130_s13  ;;  %s20_s10 = int_to_ptr.vmem [resolvable:$true] %s19_s10 }
   0x4   :  { %p134_p1 = scmp.lt.u32.totalorder %s130_s13, %s246_s0 }
   0x6   :  { %p136_p2 = pnand %p134_p1, %p131_p0 }
   0x8   :  { %139 = shalt.err (!%p136_p2)
}
   0x9   :  { %s140_s18 = scalar_lea.vmem %s20_s10, 256  ;;  %p145_p4 = scmp.lt.s32.totalorder %s20_s10, %s20_s10 }
   0xa   :  { %p141_p3 = scmp.ne.s32.totalorder %s20_s10, %s140_s18  ;;  %p146_p5 = scmp.lt.s32.totalorder %s140_s18, %s140_s18 }
   0xc   :  { %p147_p6 = por %p146_p5, %p145_p4 }
   0xe   :  { %p148_p7 = pnand %p147_p6, %p141_p3 }
  0x10   :  { %151 = shalt.err (!%p148_p7)
}
  0x11   :  { %s191_s19 = smov 128   ;;  %s192_s20 = smov 8  }
  0x12   :  { %25 = dma.hbm_to_vmem [thread:$0]  %s246_s0, 256, %s20_s10, [#allocation4], %s191_s19, %s191_s19, %s192_s20  }
  0x13   :  { %s193_s23 = smov [#allocation6]   ;;  %s152_s27 = scalar_lea.hbm %s247_s1, 256 }
  0x14   :  { %s35_s24 = sshll.u32 %s193_s23, 4  ;;  %p153_p8 = scmp.ne.s32.totalorder %s247_s1, %s152_s27  ;;  %s36_s24 = int_to_ptr.vmem [resolvable:$true] %s35_s24 }
  0x15   :  { %p156_p9 = scmp.lt.u32.totalorder %s152_s27, %s247_s1 }
  0x17   :  { %p158_p10 = pnand %p156_p9, %p153_p8 }
  0x19   :  { %161 = shalt.err (!%p158_p10)
}
  0x1a   :  { %s162_s4 = scalar_lea.vmem %s36_s24, 256  ;;  %p167_p12 = scmp.lt.s32.totalorder %s36_s24, %s36_s24 }
  0x1b   :  { %p163_p11 = scmp.ne.s32.totalorder %s36_s24, %s162_s4  ;;  %p168_p13 = scmp.lt.s32.totalorder %s162_s4, %s162_s4 }
  0x1d   :  { %p169_p0 = por %p168_p13, %p167_p12 }
  0x1f   :  { %p170_p1 = pnand %p169_p0, %p163_p11 }
  0x21   :  { %173 = shalt.err (!%p170_p1)
}
  0x22   :  { %41 = dma.hbm_to_vmem [thread:$0]  %s247_s1, 256, %s36_s24, [#allocation7], %s191_s19, %s191_s19, %s192_s20  }
  0x23   :  { %184 = dma.done.wait [#allocation4], 256  }
  0x24   :  { %185 = vsyncadd [#allocation4], 4294967040 }
  0x25   :  { %186 = dma.done.wait [#allocation7], 256  }
  0x26   :  { %187 = vsyncadd [#allocation7], 4294967040  ;;  %v57_v0 = vld [vmem:[#allocation3] sm:$0xff]  ;;  %v58_v1 = vld [vmem:[#allocation3 + $0x8] sm:$0xff]  ;;  %s174_s8 = scalar_lea.hbm %s248_s2, 16 }
  0x27   :  { %122 = vlog2.f32 %v57_v0  ;;  %v67_v2 = vsub.f32 1.0, %v57_v0  ;;  %v68_v3 = vsub.f32 1.0, %v58_v1  ;;  %v59_v15 = vld [vmem:[#allocation6] sm:$0xff]  ;;  %v60_v17 = vld [vmem:[#allocation6 + $0x8] sm:$0xff]  ;;  %p175_p2 = scmp.ne.s32.totalorder %s248_s2, %s174_s8  ;;  %p178_p3 = scmp.lt.u32.totalorder %s174_s8, %s248_s2 }
  0x28   :  { %124 = vlog2.f32 %v58_v1 }
  0x29   :  { %126 = vlog2.f32 %v67_v2  ;;  %p180_p4 = pnand %p178_p3, %p175_p2 }
  0x2a   :  { %128 = vlog2.f32 %v68_v3 }
  0x31   :  { %v123_v4 = vpop.eup %122 }
  0x32   :  { %v125_v5 = vpop.eup %124  ;;  %v62_v6 = vmul.f32 0.6931472, %v123_v4 }
  0x33   :  { %v127_v7 = vpop.eup %126  ;;  %v64_v8 = vmul.f32 0.6931472, %v125_v5 }
  0x34   :  { %v129_v9 = vpop.eup %128  ;;  %v65_v10 = vmax.f32 %v62_v6, -100.0  ;;  %v70_v11 = vmul.f32 0.6931472, %v127_v7 }
  0x35   :  { %v66_v12 = vmax.f32 %v64_v8, -100.0  ;;  %v72_v13 = vmul.f32 0.6931472, %v129_v9 }
  0x36   :  { %v73_v14 = vmax.f32 %v70_v11, -100.0 }
  0x37   :  { %v74_v16 = vmax.f32 %v72_v13, -100.0 }
  0x38   :  { %v75_v18 = vsub.f32 %v65_v10, %v73_v14 }
  0x39   :  { %v76_v19 = vsub.f32 %v66_v12, %v74_v16 }
  0x3a   :  { %v77_v20 = vmul.f32 %v75_v18, %v59_v15 }
  0x3b   :  { %v78_v21 = vmul.f32 %v76_v19, %v60_v17 }
  0x3c   :  { %v79_v22 = vadd.f32 %v77_v20, %v73_v14 }
  0x3d   :  { %v80_v23 = vadd.f32 %v78_v21, %v74_v16 }
  0x3f   :  { %v82_v24 = vadd.f32 %v80_v23, %v79_v22 }
  0x41   :  { %89 = vadd.xlane.f32.xlu0 %v82_v24 }
  0xce   :  { %v90_v25 = vpop.xlane.xlu0 %89 }
  0xcf   :  { %v91_v26 = vrot.slane %v90_v25, 4 }
  0xd1   :  { %v92_v27 = vadd.f32 %v91_v26, %v90_v25 }
  0xd3   :  { %v93_v28 = vrot.slane %v92_v27, 2 }
  0xd5   :  { %v94_v29 = vadd.f32 %v93_v28, %v92_v27 }
  0xd7   :  { %v95_v30 = vrot.slane %v94_v29, 1 }
  0xd9   :  { %v96_v31 = vadd.f32 %v95_v30, %v94_v29 }
  0xdb   :  { %115 = vpush %v96_v31 }
 0x10c   :  { %s116_s1 = spop %115 }
 0x10d   :  { %99 = sst [smem:[#allocation8]] %s116_s1 }
 0x10e   :  { %183 = shalt.err (!%p180_p4)
}
 0x10f   :  { %s194_s13 = smov [#allocation8]  }
 0x110   :  { %107 = dma.smem_to_hbm %s194_s13, 16, %s248_s2, [#allocation5]  }
 0x111   :  { %188 = dma.done.wait [#allocation5], 16  }
 0x112   :  { %189 = vsyncadd [#allocation5], 4294967280 }
 0x113   :  { %111 = sfence }
 0x114   :  { %112 = vsyncpa [#allocation4], 1 }
 0x115   :  { %113 = vsyncpa [#allocation7], 1 }
 0x116   :  { %114 = vsyncpa [#allocation5], 1 }

</bundles_post_ra>
